<compile_context>
chip_gen: v5e
topology: v5e:2x2
jax: 0.10.0
libtpu: 0.0.40
codegen_flags: <defaults>
</compile_context>

<pallas_src>
import functools

import jax
import jax.numpy as jnp
from jax.experimental import pallas as pl
from jax.experimental.pallas import tpu as pltpu


def _round_up(x, m):
    return (x + m - 1) // m * m


def _mask_estimator_kernel(mask_ref, x_ref, w1_ref, b1_ref, w2_ref, b2_ref,
                           w3_ref, b3_ref, o_ref, *, shifts):
    """Fused Conv3x3+LReLU -> Conv3x3+LReLU -> Conv3x3+Sigmoid.

    mask_ref : (9, L)  f32 border-validity mask per tap (precomputed, L lanes)
    x_ref    : (Cin_p, L)         channel-major input block, L = B_t*H*W lanes
    wK_ref   : (CoutK_p, 9*CinK_p) tap-major flattened conv weights
    bK_ref   : (CoutK_p, 1)        biases
    o_ref    : (1, L)              sigmoid mask output (lane-dense)
    """

    def conv3x3(h, w_ref, b_ref):
        # im2col kept fully in registers: 9 rolled + masked taps stacked along
        # sublanes, then ONE MXU matmul fused with the bias add.
        taps = []
        for k, s in enumerate(shifts):
            t = pltpu.roll(h, shift=s, axis=1) if s else h
            taps.append(t * mask_ref[k:k + 1, :])      # zero the padding taps
        col = jnp.concatenate(taps, axis=0)            # (9*C, L)
        return jnp.dot(w_ref[...], col,
                       preferred_element_type=jnp.float32) + b_ref[...]

    x = x_ref[...]                                     # (Cin_p, L)

    h1 = conv3x3(x, w1_ref, b1_ref)
    h1 = jnp.maximum(h1, 0.1 * h1)                     # LeakyReLU(0.1)

    h2 = conv3x3(h1, w2_ref, b2_ref)
    h2 = jnp.maximum(h2, 0.1 * h2)                     # LeakyReLU(0.1)

    y = conv3x3(h2, w3_ref, b3_ref)                    # (8, L); only row 0 is real
    y0 = y[0:1, :]
    o_ref[...] = 1.0 / (1.0 + jnp.exp(-y0))            # Sigmoid (exp on EUP)


def _prep_weights(w_hwio, b, cin_p, cout_p):
    """HWIO (3,3,Cin,Cout) -> ((Cout_p, 9*Cin_p), (Cout_p, 1)), zero-padded.

    Column ordering is tap-major: column (3*dy+dx)*Cin_p + cin."""
    kh, kw, cin, cout = w_hwio.shape
    wp = jnp.zeros((kh, kw, cin_p, cout_p), jnp.float32)
    wp = wp.at[:, :, :cin, :cout].set(w_hwio.astype(jnp.float32))
    w_flat = wp.reshape(kh * kw * cin_p, cout_p).T
    bp = jnp.zeros((cout_p, 1), jnp.float32)
    bp = bp.at[:cout, 0].set(b.astype(jnp.float32))
    return w_flat, bp


def _pick_batch_tile(n, hw, col_rows):
    """Samples per grid step (lane-axis batching)."""
    # Keep the in-register im2col (col_rows x B_t*hw f32) within ~half the
    # 64-vreg register file so Mosaic does not spill it back to VMEM.
    lane_budget = max(hw, (32 * 1024) // max(col_rows, 1))
    bt = max(1, lane_budget // hw)
    if n >= 2:
        bt = min(bt, n // 2)   # keep >= 2 grid steps: v7x has 2 TensorCores
    return max(1, min(bt, n))


def mask_estimator_forward(x_nchw, params):
    """Forward pass. Input NCHW (PyTorch convention), output NCHW (N,1,H,W)."""
    N, C, H, W = x_nchw.shape
    HW = H * W
    (w0, b0), (w1, b1), (w2, b2) = params              # HWIO weights
    cmid = w0.shape[-1]
    cin_p = _round_up(C, 8)
    cmid_p = _round_up(cmid, 8)
    cout_p = 8                                         # pad final Cout=1 to a sublane group

    bt = _pick_batch_tile(N, HW, 9 * max(cin_p, cmid_p))
    if (bt * HW) % 128 != 0:
        # Fall back to a single full-array lane block (block == full dims is legal).
        bt = N
    n_p = _round_up(N, bt)
    lb = bt * HW                                       # lanes per grid step
    grid = (n_p // bt,)

    # Channel-major, batch folded onto the lane axis: (C_p, N_p*HW).
    x = x_nchw.astype(jnp.float32).reshape(N, C, HW).transpose(1, 0, 2)
    x = jnp.pad(x, ((0, cin_p - C), (0, n_p - N), (0, 0))).reshape(cin_p, n_p * HW)

    # Border-validity masks per tap, periodic in HW so rolls never leak across
    # sample boundaries.  Precomputed once; constant index_map => DMA'd once.
    pos = jnp.arange(lb, dtype=jnp.int32) % HW
    yy = pos // W
    xx = pos % W
    rows = []
    for k in range(9):
        oy, ox = k // 3 - 1, k % 3 - 1
        rows.append(((yy + oy >= 0) & (yy + oy < H)
                     & (xx + ox >= 0) & (xx + ox < W)).astype(jnp.float32))
    masks = jnp.stack(rows)                            # (9, lb)

    w1f, b1f = _prep_weights(w0, b0, cin_p, cmid_p)
    w2f, b2f = _prep_weights(w1, b1, cmid_p, cmid_p)
    w3f, b3f = _prep_weights(w2, b2, cmid_p, cout_p)

    # Static lane shifts for the 9 taps (roll semantics: out[p] = in[p + oy*W + ox]).
    shifts = tuple((-((k // 3 - 1) * W + (k % 3 - 1))) % lb for k in range(9))
    kernel = functools.partial(_mask_estimator_kernel, shifts=shifts)

    out = pl.pallas_call(
        kernel,
        out_shape=jax.ShapeDtypeStruct((1, n_p * HW), jnp.float32),
        grid_spec=pltpu.PrefetchScalarGridSpec(
            num_scalar_prefetch=0,
            grid=grid,
            in_specs=[
                pl.BlockSpec((9, lb), lambda n: (0, 0)),            # masks (resident)
                pl.BlockSpec((cin_p, lb), lambda n: (0, n)),        # x block
                pl.BlockSpec((cmid_p, 9 * cin_p), lambda n: (0, 0)),
                pl.BlockSpec((cmid_p, 1), lambda n: (0, 0)),
                pl.BlockSpec((cmid_p, 9 * cmid_p), lambda n: (0, 0)),
                pl.BlockSpec((cmid_p, 1), lambda n: (0, 0)),
                pl.BlockSpec((cout_p, 9 * cmid_p), lambda n: (0, 0)),
                pl.BlockSpec((cout_p, 1), lambda n: (0, 0)),
            ],
            out_specs=pl.BlockSpec((1, lb), lambda n: (0, n)),
        ),
        compiler_params=pltpu.CompilerParams(
            dimension_semantics=("parallel",)),
    )(masks, x, w1f, b1f, w2f, b2f, w3f, b3f)

    return out.reshape(n_p, H, W)[:N].reshape(N, 1, H, W)


def init_params(key, ch_in):
    """Deterministic params matching PyTorch Conv2d default init shapes.

    Conv weights stored as (3, 3, Cin, Cout) [HWIO]."""
    chans = [(ch_in, ch_in // 2), (ch_in // 2, ch_in // 2), (ch_in // 2, 1)]
    params = []
    for (cin, cout) in chans:
        key, kw, kb = jax.random.split(key, 3)
        fan_in = cin * 9
        bound = 1.0 / jnp.sqrt(fan_in)
        w = jax.random.uniform(kw, (3, 3, cin, cout), jnp.float32,
                               minval=-bound, maxval=bound)
        b = jax.random.uniform(kb, (cout,), jnp.float32,
                               minval=-bound, maxval=bound)
        params.append((w, b))
    return params


def _reference_forward(x_nchw, params):
    """Pure-JAX reference (lax.conv) for correctness checking."""
    x = x_nchw.astype(jnp.float32)
    dn = jax.lax.conv_dimension_numbers(x.shape, (1, 1, 3, 3),
                                        ("NCHW", "OIHW", "NCHW"))
    acts = [lambda y: jnp.where(y >= 0, y, 0.1 * y),
            lambda y: jnp.where(y >= 0, y, 0.1 * y),
            lambda y: 1.0 / (1.0 + jnp.exp(-y))]
    for (w, b), act in zip(params, acts):
        w_oihw = jnp.transpose(w, (3, 2, 0, 1))  # HWIO -> OIHW
        x = jax.lax.conv_general_dilated(x, w_oihw, (1, 1),
                                         ((1, 1), (1, 1)),
                                         dimension_numbers=dn)
        x = act(x + b.reshape(1, -1, 1, 1))
    return x


if __name__ == "__main__":
    N, CH_IN, H, W = 2, 8, 16, 16
    key = jax.random.PRNGKey(0)
    key, kx = jax.random.split(key)
    x = jax.random.normal(kx, (N, CH_IN, H, W), jnp.float32)  # NCHW
    params = init_params(key, CH_IN)

    out = jax.jit(mask_estimator_forward)(x, params)
    out = jax.block_until_ready(out)

    assert out.shape == (N, 1, H, W), out.shape

    ref = _reference_forward(x, params)
    err = float(jnp.max(jnp.abs(out - ref)))
    assert jnp.allclose(out, ref, atol=1e-4, rtol=1e-4), err

    print("KERNEL_OK")
</pallas_src>

<mosaic_0001>
module attributes {stable_mosaic.version = 11 : i64} {
  func.func @_mask_estimator_kernel(%arg0: i32, %arg1: memref<9x256xf32, #tpu.memory_space<vmem>>, %arg2: memref<8x256xf32, #tpu.memory_space<vmem>>, %arg3: memref<8x72xf32, #tpu.memory_space<vmem>>, %arg4: memref<8x1xf32, #tpu.memory_space<vmem>>, %arg5: memref<8x72xf32, #tpu.memory_space<vmem>>, %arg6: memref<8x1xf32, #tpu.memory_space<vmem>>, %arg7: memref<8x72xf32, #tpu.memory_space<vmem>>, %arg8: memref<8x1xf32, #tpu.memory_space<vmem>>, %arg9: memref<1x256xf32, #tpu.memory_space<vmem>>) attributes {dimension_semantics = [#tpu.dimension_semantics<parallel>], iteration_bounds = array<i64: 2>, scalar_prefetch = 0 : i64, scratch_operands = 0 : i64, tpu.core_type = #tpu.core_type<tc>, window_params = [{pipeline_mode = #tpu.pipeline_mode<synchronous>, transform_indices = @transform_0, window_bounds = array<i64: 9, 256>}, {transform_indices = @transform_1, window_bounds = array<i64: 8, 256>}, {pipeline_mode = #tpu.pipeline_mode<synchronous>, transform_indices = @transform_2, window_bounds = array<i64: 8, 72>}, {pipeline_mode = #tpu.pipeline_mode<synchronous>, transform_indices = @transform_3, window_bounds = array<i64: 8, 1>}, {pipeline_mode = #tpu.pipeline_mode<synchronous>, transform_indices = @transform_4, window_bounds = array<i64: 8, 72>}, {pipeline_mode = #tpu.pipeline_mode<synchronous>, transform_indices = @transform_5, window_bounds = array<i64: 8, 1>}, {pipeline_mode = #tpu.pipeline_mode<synchronous>, transform_indices = @transform_6, window_bounds = array<i64: 8, 72>}, {pipeline_mode = #tpu.pipeline_mode<synchronous>, transform_indices = @transform_7, window_bounds = array<i64: 8, 1>}, {transform_indices = @transform_8, window_bounds = array<i64: 1, 256>}]} {
    %c0 = arith.constant 0 : index
    %c0_0 = arith.constant 0 : index
    %0 = vector.load %arg2[%c0, %c0_0] : memref<8x256xf32, #tpu.memory_space<vmem>>, vector<8x256xf32>
    %c17_i32 = arith.constant 17 : i32
    %1 = tpu.dynamic_rotate %0 by %c17_i32 dim 1 : vector<8x256xf32>, i32 -> vector<8x256xf32>
    %c0_1 = arith.constant 0 : index
    %c0_2 = arith.constant 0 : index
    %2 = vector.load %arg1[%c0_1, %c0_2] : memref<9x256xf32, #tpu.memory_space<vmem>>, vector<1x256xf32>
    %3 = vector.broadcast %2 : vector<1x256xf32> to vector<8x256xf32>
    %4 = arith.mulf %1, %3 : vector<8x256xf32>
    %c16_i32 = arith.constant 16 : i32
    %5 = tpu.dynamic_rotate %0 by %c16_i32 dim 1 : vector<8x256xf32>, i32 -> vector<8x256xf32>
    %c1 = arith.constant 1 : index
    %c0_3 = arith.constant 0 : index
    %6 = vector.load %arg1[%c1, %c0_3] : memref<9x256xf32, #tpu.memory_space<vmem>>, vector<1x256xf32>
    %7 = vector.broadcast %6 : vector<1x256xf32> to vector<8x256xf32>
    %8 = arith.mulf %5, %7 : vector<8x256xf32>
    %c15_i32 = arith.constant 15 : i32
    %9 = tpu.dynamic_rotate %0 by %c15_i32 dim 1 : vector<8x256xf32>, i32 -> vector<8x256xf32>
    %c2 = arith.constant 2 : index
    %c0_4 = arith.constant 0 : index
    %10 = vector.load %arg1[%c2, %c0_4] : memref<9x256xf32, #tpu.memory_space<vmem>>, vector<1x256xf32>
    %11 = vector.broadcast %10 : vector<1x256xf32> to vector<8x256xf32>
    %12 = arith.mulf %9, %11 : vector<8x256xf32>
    %c1_i32 = arith.constant 1 : i32
    %13 = tpu.dynamic_rotate %0 by %c1_i32 dim 1 : vector<8x256xf32>, i32 -> vector<8x256xf32>
    %c3 = arith.constant 3 : index
    %c0_5 = arith.constant 0 : index
    %14 = vector.load %arg1[%c3, %c0_5] : memref<9x256xf32, #tpu.memory_space<vmem>>, vector<1x256xf32>
    %15 = vector.broadcast %14 : vector<1x256xf32> to vector<8x256xf32>
    %16 = arith.mulf %13, %15 : vector<8x256xf32>
    %c4 = arith.constant 4 : index
    %c0_6 = arith.constant 0 : index
    %17 = vector.load %arg1[%c4, %c0_6] : memref<9x256xf32, #tpu.memory_space<vmem>>, vector<1x256xf32>
    %18 = vector.broadcast %17 : vector<1x256xf32> to vector<8x256xf32>
    %19 = arith.mulf %0, %18 : vector<8x256xf32>
    %c255_i32 = arith.constant 255 : i32
    %20 = tpu.dynamic_rotate %0 by %c255_i32 dim 1 : vector<8x256xf32>, i32 -> vector<8x256xf32>
    %c5 = arith.constant 5 : index
    %c0_7 = arith.constant 0 : index
    %21 = vector.load %arg1[%c5, %c0_7] : memref<9x256xf32, #tpu.memory_space<vmem>>, vector<1x256xf32>
    %22 = vector.broadcast %21 : vector<1x256xf32> to vector<8x256xf32>
    %23 = arith.mulf %20, %22 : vector<8x256xf32>
    %c241_i32 = arith.constant 241 : i32
    %24 = tpu.dynamic_rotate %0 by %c241_i32 dim 1 : vector<8x256xf32>, i32 -> vector<8x256xf32>
    %c6 = arith.constant 6 : index
    %c0_8 = arith.constant 0 : index
    %25 = vector.load %arg1[%c6, %c0_8] : memref<9x256xf32, #tpu.memory_space<vmem>>, vector<1x256xf32>
    %26 = vector.broadcast %25 : vector<1x256xf32> to vector<8x256xf32>
    %27 = arith.mulf %24, %26 : vector<8x256xf32>
    %c240_i32 = arith.constant 240 : i32
    %28 = tpu.dynamic_rotate %0 by %c240_i32 dim 1 : vector<8x256xf32>, i32 -> vector<8x256xf32>
    %c7 = arith.constant 7 : index
    %c0_9 = arith.constant 0 : index
    %29 = vector.load %arg1[%c7, %c0_9] : memref<9x256xf32, #tpu.memory_space<vmem>>, vector<1x256xf32>
    %30 = vector.broadcast %29 : vector<1x256xf32> to vector<8x256xf32>
    %31 = arith.mulf %28, %30 : vector<8x256xf32>
    %c239_i32 = arith.constant 239 : i32
    %32 = tpu.dynamic_rotate %0 by %c239_i32 dim 1 : vector<8x256xf32>, i32 -> vector<8x256xf32>
    %c8 = arith.constant 8 : index
    %c0_10 = arith.constant 0 : index
    %33 = vector.load %arg1[%c8, %c0_10] : memref<9x256xf32, #tpu.memory_space<vmem>>, vector<1x256xf32>
    %34 = vector.broadcast %33 : vector<1x256xf32> to vector<8x256xf32>
    %35 = arith.mulf %32, %34 : vector<8x256xf32>
    %36 = tpu.concatenate %4, %8, %12, %16, %19, %23, %27, %31, %35 in 0 : vector<8x256xf32>, vector<8x256xf32>, vector<8x256xf32>, vector<8x256xf32>, vector<8x256xf32>, vector<8x256xf32>, vector<8x256xf32>, vector<8x256xf32>, vector<8x256xf32> -> vector<72x256xf32>
    %c0_11 = arith.constant 0 : index
    %c0_12 = arith.constant 0 : index
    %37 = vector.load %arg3[%c0_11, %c0_12] : memref<8x72xf32, #tpu.memory_space<vmem>>, vector<8x72xf32>
    %cst = arith.constant dense<0.000000e+00> : vector<8x256xf32>
    %38 = tpu.matmul %37, %36, %cst {dimension_numbers = #tpu.dot_dimension_numbers<[1], [0], [0], [1], [0, 0, 1, 1], [], []>} : vector<8x72xf32>, vector<72x256xf32>, vector<8x256xf32> -> vector<8x256xf32>
    %c0_13 = arith.constant 0 : index
    %c0_14 = arith.constant 0 : index
    %39 = vector.load %arg4[%c0_13, %c0_14] : memref<8x1xf32, #tpu.memory_space<vmem>>, vector<8x1xf32>
    %40 = vector.broadcast %39 : vector<8x1xf32> to vector<8x256xf32>
    %41 = arith.addf %38, %40 : vector<8x256xf32>
    %cst_15 = arith.constant 1.000000e-01 : f32
    %42 = vector.broadcast %cst_15 : f32 to vector<8x256xf32>
    %43 = arith.mulf %42, %41 : vector<8x256xf32>
    %44 = arith.maximumf %41, %43 : vector<8x256xf32>
    %c17_i32_16 = arith.constant 17 : i32
    %45 = tpu.dynamic_rotate %44 by %c17_i32_16 dim 1 : vector<8x256xf32>, i32 -> vector<8x256xf32>
    %c0_17 = arith.constant 0 : index
    %c0_18 = arith.constant 0 : index
    %46 = vector.load %arg1[%c0_17, %c0_18] : memref<9x256xf32, #tpu.memory_space<vmem>>, vector<1x256xf32>
    %47 = vector.broadcast %46 : vector<1x256xf32> to vector<8x256xf32>
    %48 = arith.mulf %45, %47 : vector<8x256xf32>
    %c16_i32_19 = arith.constant 16 : i32
    %49 = tpu.dynamic_rotate %44 by %c16_i32_19 dim 1 : vector<8x256xf32>, i32 -> vector<8x256xf32>
    %c1_20 = arith.constant 1 : index
    %c0_21 = arith.constant 0 : index
    %50 = vector.load %arg1[%c1_20, %c0_21] : memref<9x256xf32, #tpu.memory_space<vmem>>, vector<1x256xf32>
    %51 = vector.broadcast %50 : vector<1x256xf32> to vector<8x256xf32>
    %52 = arith.mulf %49, %51 : vector<8x256xf32>
    %c15_i32_22 = arith.constant 15 : i32
    %53 = tpu.dynamic_rotate %44 by %c15_i32_22 dim 1 : vector<8x256xf32>, i32 -> vector<8x256xf32>
    %c2_23 = arith.constant 2 : index
    %c0_24 = arith.constant 0 : index
    %54 = vector.load %arg1[%c2_23, %c0_24] : memref<9x256xf32, #tpu.memory_space<vmem>>, vector<1x256xf32>
    %55 = vector.broadcast %54 : vector<1x256xf32> to vector<8x256xf32>
    %56 = arith.mulf %53, %55 : vector<8x256xf32>
    %c1_i32_25 = arith.constant 1 : i32
    %57 = tpu.dynamic_rotate %44 by %c1_i32_25 dim 1 : vector<8x256xf32>, i32 -> vector<8x256xf32>
    %c3_26 = arith.constant 3 : index
    %c0_27 = arith.constant 0 : index
    %58 = vector.load %arg1[%c3_26, %c0_27] : memref<9x256xf32, #tpu.memory_space<vmem>>, vector<1x256xf32>
    %59 = vector.broadcast %58 : vector<1x256xf32> to vector<8x256xf32>
    %60 = arith.mulf %57, %59 : vector<8x256xf32>
    %c4_28 = arith.constant 4 : index
    %c0_29 = arith.constant 0 : index
    %61 = vector.load %arg1[%c4_28, %c0_29] : memref<9x256xf32, #tpu.memory_space<vmem>>, vector<1x256xf32>
    %62 = vector.broadcast %61 : vector<1x256xf32> to vector<8x256xf32>
    %63 = arith.mulf %44, %62 : vector<8x256xf32>
    %c255_i32_30 = arith.constant 255 : i32
    %64 = tpu.dynamic_rotate %44 by %c255_i32_30 dim 1 : vector<8x256xf32>, i32 -> vector<8x256xf32>
    %c5_31 = arith.constant 5 : index
    %c0_32 = arith.constant 0 : index
    %65 = vector.load %arg1[%c5_31, %c0_32] : memref<9x256xf32, #tpu.memory_space<vmem>>, vector<1x256xf32>
    %66 = vector.broadcast %65 : vector<1x256xf32> to vector<8x256xf32>
    %67 = arith.mulf %64, %66 : vector<8x256xf32>
    %c241_i32_33 = arith.constant 241 : i32
    %68 = tpu.dynamic_rotate %44 by %c241_i32_33 dim 1 : vector<8x256xf32>, i32 -> vector<8x256xf32>
    %c6_34 = arith.constant 6 : index
    %c0_35 = arith.constant 0 : index
    %69 = vector.load %arg1[%c6_34, %c0_35] : memref<9x256xf32, #tpu.memory_space<vmem>>, vector<1x256xf32>
    %70 = vector.broadcast %69 : vector<1x256xf32> to vector<8x256xf32>
    %71 = arith.mulf %68, %70 : vector<8x256xf32>
    %c240_i32_36 = arith.constant 240 : i32
    %72 = tpu.dynamic_rotate %44 by %c240_i32_36 dim 1 : vector<8x256xf32>, i32 -> vector<8x256xf32>
    %c7_37 = arith.constant 7 : index
    %c0_38 = arith.constant 0 : index
    %73 = vector.load %arg1[%c7_37, %c0_38] : memref<9x256xf32, #tpu.memory_space<vmem>>, vector<1x256xf32>
    %74 = vector.broadcast %73 : vector<1x256xf32> to vector<8x256xf32>
    %75 = arith.mulf %72, %74 : vector<8x256xf32>
    %c239_i32_39 = arith.constant 239 : i32
    %76 = tpu.dynamic_rotate %44 by %c239_i32_39 dim 1 : vector<8x256xf32>, i32 -> vector<8x256xf32>
    %c8_40 = arith.constant 8 : index
    %c0_41 = arith.constant 0 : index
    %77 = vector.load %arg1[%c8_40, %c0_41] : memref<9x256xf32, #tpu.memory_space<vmem>>, vector<1x256xf32>
    %78 = vector.broadcast %77 : vector<1x256xf32> to vector<8x256xf32>
    %79 = arith.mulf %76, %78 : vector<8x256xf32>
    %80 = tpu.concatenate %48, %52, %56, %60, %63, %67, %71, %75, %79 in 0 : vector<8x256xf32>, vector<8x256xf32>, vector<8x256xf32>, vector<8x256xf32>, vector<8x256xf32>, vector<8x256xf32>, vector<8x256xf32>, vector<8x256xf32>, vector<8x256xf32> -> vector<72x256xf32>
    %c0_42 = arith.constant 0 : index
    %c0_43 = arith.constant 0 : index
    %81 = vector.load %arg5[%c0_42, %c0_43] : memref<8x72xf32, #tpu.memory_space<vmem>>, vector<8x72xf32>
    %cst_44 = arith.constant dense<0.000000e+00> : vector<8x256xf32>
    %82 = tpu.matmul %81, %80, %cst_44 {dimension_numbers = #tpu.dot_dimension_numbers<[1], [0], [0], [1], [0, 0, 1, 1], [], []>} : vector<8x72xf32>, vector<72x256xf32>, vector<8x256xf32> -> vector<8x256xf32>
    %c0_45 = arith.constant 0 : index
    %c0_46 = arith.constant 0 : index
    %83 = vector.load %arg6[%c0_45, %c0_46] : memref<8x1xf32, #tpu.memory_space<vmem>>, vector<8x1xf32>
    %84 = vector.broadcast %83 : vector<8x1xf32> to vector<8x256xf32>
    %85 = arith.addf %82, %84 : vector<8x256xf32>
    %cst_47 = arith.constant 1.000000e-01 : f32
    %86 = vector.broadcast %cst_47 : f32 to vector<8x256xf32>
    %87 = arith.mulf %86, %85 : vector<8x256xf32>
    %88 = arith.maximumf %85, %87 : vector<8x256xf32>
    %c17_i32_48 = arith.constant 17 : i32
    %89 = tpu.dynamic_rotate %88 by %c17_i32_48 dim 1 : vector<8x256xf32>, i32 -> vector<8x256xf32>
    %c0_49 = arith.constant 0 : index
    %c0_50 = arith.constant 0 : index
    %90 = vector.load %arg1[%c0_49, %c0_50] : memref<9x256xf32, #tpu.memory_space<vmem>>, vector<1x256xf32>
    %91 = vector.broadcast %90 : vector<1x256xf32> to vector<8x256xf32>
    %92 = arith.mulf %89, %91 : vector<8x256xf32>
    %c16_i32_51 = arith.constant 16 : i32
    %93 = tpu.dynamic_rotate %88 by %c16_i32_51 dim 1 : vector<8x256xf32>, i32 -> vector<8x256xf32>
    %c1_52 = arith.constant 1 : index
    %c0_53 = arith.constant 0 : index
    %94 = vector.load %arg1[%c1_52, %c0_53] : memref<9x256xf32, #tpu.memory_space<vmem>>, vector<1x256xf32>
    %95 = vector.broadcast %94 : vector<1x256xf32> to vector<8x256xf32>
    %96 = arith.mulf %93, %95 : vector<8x256xf32>
    %c15_i32_54 = arith.constant 15 : i32
    %97 = tpu.dynamic_rotate %88 by %c15_i32_54 dim 1 : vector<8x256xf32>, i32 -> vector<8x256xf32>
    %c2_55 = arith.constant 2 : index
    %c0_56 = arith.constant 0 : index
    %98 = vector.load %arg1[%c2_55, %c0_56] : memref<9x256xf32, #tpu.memory_space<vmem>>, vector<1x256xf32>
    %99 = vector.broadcast %98 : vector<1x256xf32> to vector<8x256xf32>
    %100 = arith.mulf %97, %99 : vector<8x256xf32>
    %c1_i32_57 = arith.constant 1 : i32
    %101 = tpu.dynamic_rotate %88 by %c1_i32_57 dim 1 : vector<8x256xf32>, i32 -> vector<8x256xf32>
    %c3_58 = arith.constant 3 : index
    %c0_59 = arith.constant 0 : index
    %102 = vector.load %arg1[%c3_58, %c0_59] : memref<9x256xf32, #tpu.memory_space<vmem>>, vector<1x256xf32>
    %103 = vector.broadcast %102 : vector<1x256xf32> to vector<8x256xf32>
    %104 = arith.mulf %101, %103 : vector<8x256xf32>
    %c4_60 = arith.constant 4 : index
    %c0_61 = arith.constant 0 : index
    %105 = vector.load %arg1[%c4_60, %c0_61] : memref<9x256xf32, #tpu.memory_space<vmem>>, vector<1x256xf32>
    %106 = vector.broadcast %105 : vector<1x256xf32> to vector<8x256xf32>
    %107 = arith.mulf %88, %106 : vector<8x256xf32>
    %c255_i32_62 = arith.constant 255 : i32
    %108 = tpu.dynamic_rotate %88 by %c255_i32_62 dim 1 : vector<8x256xf32>, i32 -> vector<8x256xf32>
    %c5_63 = arith.constant 5 : index
    %c0_64 = arith.constant 0 : index
    %109 = vector.load %arg1[%c5_63, %c0_64] : memref<9x256xf32, #tpu.memory_space<vmem>>, vector<1x256xf32>
    %110 = vector.broadcast %109 : vector<1x256xf32> to vector<8x256xf32>
    %111 = arith.mulf %108, %110 : vector<8x256xf32>
    %c241_i32_65 = arith.constant 241 : i32
    %112 = tpu.dynamic_rotate %88 by %c241_i32_65 dim 1 : vector<8x256xf32>, i32 -> vector<8x256xf32>
    %c6_66 = arith.constant 6 : index
    %c0_67 = arith.constant 0 : index
    %113 = vector.load %arg1[%c6_66, %c0_67] : memref<9x256xf32, #tpu.memory_space<vmem>>, vector<1x256xf32>
    %114 = vector.broadcast %113 : vector<1x256xf32> to vector<8x256xf32>
    %115 = arith.mulf %112, %114 : vector<8x256xf32>
    %c240_i32_68 = arith.constant 240 : i32
    %116 = tpu.dynamic_rotate %88 by %c240_i32_68 dim 1 : vector<8x256xf32>, i32 -> vector<8x256xf32>
    %c7_69 = arith.constant 7 : index
    %c0_70 = arith.constant 0 : index
    %117 = vector.load %arg1[%c7_69, %c0_70] : memref<9x256xf32, #tpu.memory_space<vmem>>, vector<1x256xf32>
    %118 = vector.broadcast %117 : vector<1x256xf32> to vector<8x256xf32>
    %119 = arith.mulf %116, %118 : vector<8x256xf32>
    %c239_i32_71 = arith.constant 239 : i32
    %120 = tpu.dynamic_rotate %88 by %c239_i32_71 dim 1 : vector<8x256xf32>, i32 -> vector<8x256xf32>
    %c8_72 = arith.constant 8 : index
    %c0_73 = arith.constant 0 : index
    %121 = vector.load %arg1[%c8_72, %c0_73] : memref<9x256xf32, #tpu.memory_space<vmem>>, vector<1x256xf32>
    %122 = vector.broadcast %121 : vector<1x256xf32> to vector<8x256xf32>
    %123 = arith.mulf %120, %122 : vector<8x256xf32>
    %124 = tpu.concatenate %92, %96, %100, %104, %107, %111, %115, %119, %123 in 0 : vector<8x256xf32>, vector<8x256xf32>, vector<8x256xf32>, vector<8x256xf32>, vector<8x256xf32>, vector<8x256xf32>, vector<8x256xf32>, vector<8x256xf32>, vector<8x256xf32> -> vector<72x256xf32>
    %c0_74 = arith.constant 0 : index
    %c0_75 = arith.constant 0 : index
    %125 = vector.load %arg7[%c0_74, %c0_75] : memref<8x72xf32, #tpu.memory_space<vmem>>, vector<8x72xf32>
    %cst_76 = arith.constant dense<0.000000e+00> : vector<8x256xf32>
    %126 = tpu.matmul %125, %124, %cst_76 {dimension_numbers = #tpu.dot_dimension_numbers<[1], [0], [0], [1], [0, 0, 1, 1], [], []>} : vector<8x72xf32>, vector<72x256xf32>, vector<8x256xf32> -> vector<8x256xf32>
    %c0_77 = arith.constant 0 : index
    %c0_78 = arith.constant 0 : index
    %127 = vector.load %arg8[%c0_77, %c0_78] : memref<8x1xf32, #tpu.memory_space<vmem>>, vector<8x1xf32>
    %128 = vector.broadcast %127 : vector<8x1xf32> to vector<8x256xf32>
    %129 = arith.addf %126, %128 : vector<8x256xf32>
    %130 = vector.extract_strided_slice %129 {offsets = [0, 0], sizes = [1, 256], strides = [1, 1]} : vector<8x256xf32> to vector<1x256xf32>
    %cst_79 = arith.constant 0.000000e+00 : f32
    %131 = vector.broadcast %cst_79 : f32 to vector<1x256xf32>
    %132 = arith.subf %131, %130 : vector<1x256xf32>
    %133 = math.exp %132 : vector<1x256xf32>
    %cst_80 = arith.constant 1.000000e+00 : f32
    %134 = vector.broadcast %cst_80 : f32 to vector<1x256xf32>
    %135 = arith.addf %134, %133 : vector<1x256xf32>
    %cst_81 = arith.constant 1.000000e+00 : f32
    %136 = vector.broadcast %cst_81 : f32 to vector<1x256xf32>
    %137 = arith.divf %136, %135 : vector<1x256xf32>
    %c0_82 = arith.constant 0 : index
    %c0_83 = arith.constant 0 : index
    %138 = vector.load %arg9[%c0_82, %c0_83] : memref<1x256xf32, #tpu.memory_space<vmem>>, vector<1x256xf32>
    tpu.vector_store %arg9[%c0_82, %c0_83], %137 {strides = array<i32>} : memref<1x256xf32, #tpu.memory_space<vmem>>, vector<1x256xf32>,
    return
  }
  func.func @transform_0(%arg0: i32) -> (i32, i32) {
    %c0_i32 = arith.constant 0 : i32
    %c0_i32_0 = arith.constant 0 : i32
    %c0_i32_1 = arith.constant 0 : i32
    return %c0_i32, %c0_i32_0 : i32, i32
  }
  func.func @transform_1(%arg0: i32) -> (i32, i32) {
    %c0_i32 = arith.constant 0 : i32
    %c0_i32_0 = arith.constant 0 : i32
    return %c0_i32, %arg0 : i32, i32
  }
  func.func @transform_2(%arg0: i32) -> (i32, i32) {
    %c0_i32 = arith.constant 0 : i32
    %c0_i32_0 = arith.constant 0 : i32
    %c0_i32_1 = arith.constant 0 : i32
    return %c0_i32, %c0_i32_0 : i32, i32
  }
  func.func @transform_3(%arg0: i32) -> (i32, i32) {
    %c0_i32 = arith.constant 0 : i32
    %c0_i32_0 = arith.constant 0 : i32
    %c0_i32_1 = arith.constant 0 : i32
    return %c0_i32, %c0_i32_0 : i32, i32
  }
  func.func @transform_4(%arg0: i32) -> (i32, i32) {
    %c0_i32 = arith.constant 0 : i32
    %c0_i32_0 = arith.constant 0 : i32
    %c0_i32_1 = arith.constant 0 : i32
    return %c0_i32, %c0_i32_0 : i32, i32
  }
  func.func @transform_5(%arg0: i32) -> (i32, i32) {
    %c0_i32 = arith.constant 0 : i32
    %c0_i32_0 = arith.constant 0 : i32
    %c0_i32_1 = arith.constant 0 : i32
    return %c0_i32, %c0_i32_0 : i32, i32
  }
  func.func @transform_6(%arg0: i32) -> (i32, i32) {
    %c0_i32 = arith.constant 0 : i32
    %c0_i32_0 = arith.constant 0 : i32
    %c0_i32_1 = arith.constant 0 : i32
    return %c0_i32, %c0_i32_0 : i32, i32
  }
  func.func @transform_7(%arg0: i32) -> (i32, i32) {
    %c0_i32 = arith.constant 0 : i32
    %c0_i32_0 = arith.constant 0 : i32
    %c0_i32_1 = arith.constant 0 : i32
    return %c0_i32, %c0_i32_0 : i32, i32
  }
  func.func @transform_8(%arg0: i32) -> (i32, i32) {
    %c0_i32 = arith.constant 0 : i32
    %c0_i32_0 = arith.constant 0 : i32
    return %c0_i32, %arg0 : i32, i32
  }
}

</mosaic_0001>

<bundles_post_ra>
// kernel: mask_estimator_forward.1
= control target key start
LH: loop header
LB: loop body
LE: loop exit
PB: predicated region body
PF: predicated region fallthrough
CT: control target
= control target key end

     0   :  { %s950_s27 = smov 0   ;;  %s1296_s0 = inlined_call_operand.vmem [shape: f32[9,256], index: 0, kind: input, shape index: {}]   ;;  %s1297_s1 = inlined_call_operand.vmem [shape: f32[8,512], index: 1, kind: input, shape index: {}]   ;;  %s1298_s2 = inlined_call_operand.vmem [shape: f32[8,72], index: 2, kind: input, shape index: {}]   ;;  %s1299_s3 = inlined_call_operand.vmem [shape: f32[8,1], index: 3, kind: input, shape index: {}]   ;;  %s1300_s4 = inlined_call_operand.vmem [shape: f32[8,72], index: 4, kind: input, shape index: {}]   ;;  %s1301_s5 = inlined_call_operand.vmem [shape: f32[8,1], index: 5, kind: input, shape index: {}]   ;;  %s1302_s6 = inlined_call_operand.vmem [shape: f32[8,72], index: 6, kind: input, shape index: {}]   ;;  %s1303_s7 = inlined_call_operand.vmem [shape: f32[8,1], index: 7, kind: input, shape index: {}]   ;;  %s1304_s8 = inlined_call_operand.vmem [shape: f32[1,512], index: 8, kind: output, shape index: {}]  }
   0x1 LB: > { %s837_s28 = sadd.s32 4294967295, %s894_s27   ;;  %p841_p0 = scmp.ge.s32.totalorder %s894_s27, 1  ;;  %s894_s27 = sphi %s950_s27, %s18_s27  }
   0x2   : > { %p263_p1 = scmp.lt.s32.totalorder %s894_s27, 3 }
   0x4   : > { %p264_p2 = pnand %p841_p0, %p263_p1 }
   0x5   : > { %s842_s29 = sshll.u32 (!%p264_p2), %s837_s28, 1  ;;  %s896_s12 = smov (!%p264_p2), 112  }
   0x6   : > { %267 = sbr.rel (%p264_p2) target bundleno = 920 (0x398), region = 52  ;;  %p297_p3 = scmp.lt.s32.totalorder (!%p264_p2), %s842_s29, 3 }
   0x7   : > { %s897_s13 = smov (!%p264_p2), 111   ;;  %s898_s14 = smov (!%p264_p2), 113  }
   0x8   : > { %s899_s15 = smov (!%p264_p2), 127   ;;  %s900_s16 = smov (!%p264_p2), 1  }
   0x9   : > { %s901_s17 = smov (!%p264_p2), 15   ;;  %s902_s18 = smov (!%p264_p2), 16  }
   0xa   : > { %s903_s19 = smov (!%p264_p2), 17  }
   0xb   : > { %s1308_s29 = smov (!%p297_p3, %s842_s29), 3  ;;  %v313_v3 = vlaneseq  ;;  %v852_v7 = vld [vmem:[%s1296_s0 + $0x10] ss:$8 sm:$0x3]  ;;  %v448_v38 = vld [vmem:[%s1299_s3] sm:$0xff]  ;;  %v904_v39 = vmov 0  }
   0xc   : > { %s843_s30 = sshll.u32 %s1308_s29, 3  ;;  %v851_v9 = vld [vmem:[%s1296_s0 + $0x7] ss:$8 sm:$0x3]  ;;  %v1011_v10 = vperm.slane %v852_v7, 0  ;;  %v1013_v11 = vperm.slane %v852_v7, 1  ;;  %878 = vset.pattern.permute.xlu1 %v904_v39  ;;  %879 = vset.pattern.permute.xlu0 %v904_v39 }
   0xd   : > { %s300_s11 = scalar_lea.vmem %s1297_s1, %s843_s30  ;;  %v1001_v6 = vand.u32 127, %v313_v3  ;;  %v850_v12 = vld [vmem:[%s1296_s0 + $0x6] ss:$8 sm:$0x3]  ;;  %v1019_v15 = vperm.slane %v851_v9, 0  ;;  %v1021_v16 = vperm.slane %v851_v9, 1 }
   0xe   : > { %v964_v0 = vld [vmem:[%s300_s11] sm:$0xff]  ;;  %v972_v1 = vld [vmem:[%s300_s11 + $0x8] sm:$0xff]  ;;  %v1033_v23 = vperm.slane %v850_v12, 0  ;;  %v1035_v24 = vperm.slane %v850_v12, 1  ;;  %vm454_vm8 = vcmask 588800  }
   0xf   : > { %415 = vrot.lane.b32.xlu1 %v964_v0, %s896_s12  ;;  %431 = vrot.lane.b32.xlu0 %v964_v0, %s897_s13  ;;  %vm419_vm0 = vcmp.lt.s32.totalorder %v1001_v6, 112  ;;  %vm435_vm1 = vcmp.lt.s32.totalorder %v1001_v6, 111  ;;  %vm403_vm2 = vcmp.lt.s32.totalorder %v1001_v6, 113  ;;  %v849_v25 = vld [vmem:[%s1296_s0 + $0x5] ss:$8 sm:$0x3] }
  0x10   : > { %399 = vrot.lane.b32.xlu2 %v964_v0, %s898_s14  ;;  %v848_v28 = vld [vmem:[%s1296_s0 + $0x4] ss:$8 sm:$0x3]  ;;  %vm387_vm3 = vcmp.lt.s32.totalorder %v1001_v6, 127  ;;  %v1050_v32 = vperm.slane %v849_v25, 0  ;;  %v1052_v33 = vperm.slane %v849_v25, 1 }
  0x11   : > { %v1056_v36 = vperm.slane %v848_v28, 0  ;;  %v1058_v37 = vperm.slane %v848_v28, 1  ;;  %v847_v48 = vld [vmem:[%s1296_s0 + $0x3] ss:$8 sm:$0x3]  ;;  %vm362_vm4 = vcmp.lt.s32.totalorder %v1001_v6, 1 }
  0x12   : > { %v846_v49 = vld [vmem:[%s1296_s0 + $0x2] ss:$8 sm:$0x3]  ;;  %v1080_v50 = vperm.slane %v847_v48, 0  ;;  %v1082_v51 = vperm.slane %v847_v48, 1  ;;  %vm346_vm5 = vcmp.lt.s32.totalorder %v1001_v6, 15 }
  0x13   : > { %v381_v46 = vmul.f32 %v1056_v36, %v964_v0  ;;  %v382_v47 = vmul.f32 %v1058_v37, %v972_v1  ;;  %v1085_v53 = vperm.slane %v846_v49, 0  ;;  %v1087_v54 = vperm.slane %v846_v49, 1 }
  0x14   : > { %vm330_vm6 = vcmp.lt.s32.totalorder %v1001_v6, 16  ;;  %vm315_vm7 = vcmp.lt.s32.totalorder %v1001_v6, 17 }
  0x17   : > { %417 = vrot.lane.b32.xlu1 %v972_v1, %s896_s12  ;;  %433 = vrot.lane.b32.xlu0 %v972_v1, %s897_s13 }
  0x18   : > { %401 = vrot.lane.b32.xlu2 %v972_v1, %s898_s14 }
  0x1f   : > { %385 = vrot.lane.b32.xlu1 %v972_v1, %s899_s15  ;;  %383 = vrot.lane.b32.xlu0 %v964_v0, %s899_s15 }
  0x20   : > { %358 = vrot.lane.b32.xlu2 %v964_v0, %s900_s16 }
  0x27   : > { %342 = vrot.lane.b32.xlu1 %v964_v0, %s901_s17  ;;  %360 = vrot.lane.b32.xlu0 %v972_v1, %s900_s16 }
  0x28   : > { %344 = vrot.lane.b32.xlu2 %v972_v1, %s901_s17 }
  0x2f   : > { %328 = vrot.lane.b32.xlu1 %v972_v1, %s902_s18  ;;  %326 = vrot.lane.b32.xlu0 %v964_v0, %s902_s18 }
  0x30   : > { %309 = vrot.lane.b32.xlu2 %v964_v0, %s903_s19 }
  0x37   : > { %311 = vrot.lane.b32.xlu0 %v972_v1, %s903_s19  ;;  %451 = vperm.xlu1 %878, %v448_v38   ;;  %v845_v1 = vld [vmem:[%s1296_s0 + $0x1] ss:$8 sm:$0x3] }
  0x6a   : > { %v400_v2 = vpop.permute.xlu2 %399 }
  0x72   : > { %v402_v8 = vpop.permute.xlu2 %401 }
  0x73   : > { %v404_v26 = vsel %vm403_vm2, %v400_v2, %v402_v8  ;;  %v405_v27 = vsel %vm403_vm2, %v402_v8, %v400_v2  ;;  %v1105_v2 = vperm.slane %v845_v1, 0 }
  0x74   : > { %v413_v34 = vmul.f32 %v1033_v23, %v404_v26  ;;  %v414_v35 = vmul.f32 %v1035_v24, %v405_v27  ;;  %v447_v27 = vld [vmem:[%s1298_s2] sm:$0xff] }
  0x7a   : > { %v359_v31 = vpop.permute.xlu2 %358 }
  0x81   : > { %v416_v4 = vpop.permute.xlu1 %415  ;;  %v432_v5 = vpop.permute.xlu0 %431 }
  0x82   : > { %v345_v52 = vpop.permute.xlu2 %344 }
  0x89   : > { %v418_v13 = vpop.permute.xlu1 %417  ;;  %v434_v14 = vpop.permute.xlu0 %433 }
  0x8a   : > { %v420_v17 = vsel %vm419_vm0, %v416_v4, %v418_v13  ;;  %v421_v18 = vsel %vm419_vm0, %v418_v13, %v416_v4  ;;  %v436_v19 = vsel %vm435_vm1, %v432_v5, %v434_v14  ;;  %v437_v20 = vsel %vm435_vm1, %v434_v14, %v432_v5  ;;  %v318_v14 = vld [vmem:[%s1296_s0] ss:$8 sm:$0x3] }
  0x8b   : > { %v445_v21 = vmul.f32 %v1011_v10, %v436_v19  ;;  %v446_v22 = vmul.f32 %v1013_v11, %v437_v20  ;;  %v429_v29 = vmul.f32 %v1019_v15, %v420_v17  ;;  %v430_v30 = vmul.f32 %v1021_v16, %v421_v18  ;;  %v310_v17 = vpop.permute.xlu2 %309 }
  0x8c   : > { %v1107_v4 = vperm.slane %v845_v1, 1  ;;  %v1119_v18 = vperm.slane %v318_v14, 0  ;;  %v1121_v19 = vperm.slane %v318_v14, 1 }
  0x8d   : > { %465 = vmatpush.msra.mxu0 %v445_v21  ;;  %485 = vmatpush.msra.mxu1 %v446_v22 }
  0x8f   : > { %466 = vmatpush.msra.mxu0 %v429_v29  ;;  %486 = vmatpush.msra.mxu1 %v430_v30 }
  0x91   : > { %v386_v40 = vpop.permute.xlu1 %385  ;;  %467 = vmatpush.msra.mxu0 %v413_v34  ;;  %487 = vmatpush.msra.mxu1 %v414_v35  ;;  %v384_v41 = vpop.permute.xlu0 %383 }
  0x92   : > { %v388_v42 = vsel %vm387_vm3, %v384_v41, %v386_v40  ;;  %v389_v43 = vsel %vm387_vm3, %v386_v40, %v384_v41 }
  0x93   : > { %v397_v44 = vmul.f32 %v1050_v32, %v388_v42  ;;  %v398_v45 = vmul.f32 %v1052_v33, %v389_v43 }
  0x95   : > { %468 = vmatpush.msra.mxu0 %v397_v44  ;;  %488 = vmatpush.msra.mxu1 %v398_v45 }
  0x97   : > { %469 = vmatpush.msra.mxu0 %v381_v46  ;;  %489 = vmatpush.msra.mxu1 %v382_v47 }
  0x99   : > { %v343_v55 = vpop.permute.xlu1 %342  ;;  %v361_v56 = vpop.permute.xlu0 %360 }
  0x9a   : > { %v363_v57 = vsel %vm362_vm4, %v359_v31, %v361_v56  ;;  %v364_v58 = vsel %vm362_vm4, %v361_v56, %v359_v31  ;;  %v347_v59 = vsel %vm346_vm5, %v343_v55, %v345_v52  ;;  %v348_v60 = vsel %vm346_vm5, %v345_v52, %v343_v55 }
  0x9b   : > { %v372_v61 = vmul.f32 %v1080_v50, %v364_v58  ;;  %v373_v62 = vmul.f32 %v1082_v51, %v363_v57  ;;  %v356_v63 = vmul.f32 %v1085_v53, %v348_v60  ;;  %v357_v0 = vmul.f32 %v1087_v54, %v347_v59  ;;  %v569_v58 = vld [vmem:[%s1301_s5] sm:$0xff] }
  0x9d   : > { %470 = vmatpush.msra.mxu0 %v372_v61  ;;  %490 = vmatpush.msra.mxu1 %v373_v62 }
  0x9f   : > { %471 = vmatpush.msra.mxu0 %v356_v63  ;;  %491 = vmatpush.msra.mxu1 %v357_v0 }
  0xa1   : > { %v329_v5 = vpop.permute.xlu1 %328  ;;  %v327_v7 = vpop.permute.xlu0 %326 }
  0xa2   : > { %v331_v8 = vsel %vm330_vm6, %v327_v7, %v329_v5  ;;  %v332_v9 = vsel %vm330_vm6, %v329_v5, %v327_v7 }
  0xa3   : > { %v340_v12 = vmul.f32 %v1105_v2, %v332_v9  ;;  %v341_v13 = vmul.f32 %v1107_v4, %v331_v8 }
  0xa5   : > { %472 = vmatpush.msra.mxu0 %v340_v12  ;;  %492 = vmatpush.msra.mxu1 %v341_v13 }
  0xa9   : > { %v312_v20 = vpop.permute.xlu0 %311  ;;  %v452_v28 = vpop.permute.xlu1 %451 }
  0xaa   : > { %v316_v21 = vsel %vm315_vm7, %v310_v17, %v312_v20  ;;  %v317_v22 = vsel %vm315_vm7, %v312_v20, %v310_v17 }
  0xab   : > { %v324_v25 = vmul.f32 %v1119_v18, %v317_v22  ;;  %v325_v26 = vmul.f32 %v1121_v19, %v316_v21 }
  0xad   : > { %473 = vmatpush.msra.mxu0 %v324_v25  ;;  %493 = vmatpush.msra.mxu1 %v325_v26 }
  0xae   : > { %853 = vmatmul.msk.f32.vlgmr.msra.gmra.mxu0 %vm454_vm8, %v447_v27  ;;  %854 = vmatmul.msk.f32.vlgmr.msra.gmra.mxu1 %vm454_vm8, %v447_v27 }
 0x12b   : > { %v475_v29 = vpop.f32.mrf.mxu0  ;;  %v495_v30 = vpop.f32.mrf.mxu1 }
 0x12c   : > { %v476_v31 = vadd.f32 %v475_v29, %v452_v28  ;;  %v496_v34 = vadd.f32 %v495_v30, %v452_v28 }
 0x12e   : > { %v498_v35 = vmul.f32 0.1, %v476_v31  ;;  %v499_v38 = vmul.f32 0.1, %v496_v34 }
 0x130   : > { %v500_v39 = vmax.f32 %v476_v31, %v498_v35  ;;  %v501_v40 = vmax.f32 %v496_v34, %v499_v38 }
 0x132   : > { %562 = vrot.lane.b32.xlu0 %v501_v40, %s897_s13  ;;  %552 = vrot.lane.b32.xlu1 %v500_v39, %s896_s12  ;;  %v534_v20 = vmul.f32 %v500_v39, %v1056_v36  ;;  %v535_v21 = vmul.f32 %v501_v40, %v1058_v37 }
 0x133   : > { %560 = vrot.lane.b32.xlu2 %v500_v39, %s897_s13 }
 0x13a   : > { %544 = vrot.lane.b32.xlu0 %v500_v39, %s898_s14  ;;  %546 = vrot.lane.b32.xlu1 %v501_v40, %s898_s14 }
 0x13b   : > { %554 = vrot.lane.b32.xlu2 %v501_v40, %s896_s12 }
 0x142   : > { %538 = vrot.lane.b32.xlu0 %v501_v40, %s899_s15  ;;  %526 = vrot.lane.b32.xlu1 %v500_v39, %s900_s16 }
 0x143   : > { %536 = vrot.lane.b32.xlu2 %v500_v39, %s899_s15 }
 0x14a   : > { %518 = vrot.lane.b32.xlu0 %v500_v39, %s901_s17  ;;  %520 = vrot.lane.b32.xlu1 %v501_v40, %s901_s17 }
 0x14b   : > { %528 = vrot.lane.b32.xlu2 %v501_v40, %s900_s16 }
 0x152   : > { %512 = vrot.lane.b32.xlu0 %v501_v40, %s902_s18  ;;  %502 = vrot.lane.b32.xlu1 %v500_v39, %s903_s19 }
 0x153   : > { %510 = vrot.lane.b32.xlu2 %v500_v39, %s902_s18 }
 0x15a   : > { %572 = vperm.xlu0 %879, %v569_v58  }
 0x15b   : > { %504 = vrot.lane.b32.xlu2 %v501_v40, %s903_s19 }
 0x18d   : > { %v561_v41 = vpop.permute.xlu2 %560 }
 0x195   : > { %v555_v42 = vpop.permute.xlu2 %554 }
 0x19d   : > { %v537_v45 = vpop.permute.xlu2 %536 }
 0x1a4   : > { %v563_v43 = vpop.permute.xlu0 %562  ;;  %v553_v44 = vpop.permute.xlu1 %552 }
 0x1a5   : > { %v556_v46 = vsel %vm419_vm0, %v553_v44, %v555_v42  ;;  %v557_v47 = vsel %vm419_vm0, %v555_v42, %v553_v44  ;;  %v564_v48 = vsel %vm435_vm1, %v561_v41, %v563_v43  ;;  %v565_v49 = vsel %vm435_vm1, %v563_v43, %v561_v41  ;;  %v529_v1 = vpop.permute.xlu2 %528 }
 0x1a6   : > { %v566_v52 = vmul.f32 %v564_v48, %v1011_v10  ;;  %v567_v55 = vmul.f32 %v565_v49, %v1013_v11  ;;  %v558_v56 = vmul.f32 %v556_v46, %v1019_v15  ;;  %v559_v57 = vmul.f32 %v557_v47, %v1021_v16  ;;  %v568_v48 = vld [vmem:[%s1300_s4] sm:$0xff] }
 0x1a8   : > { %585 = vmatpush.msra.mxu2 %v566_v52  ;;  %605 = vmatpush.msra.mxu3 %v567_v55 }
 0x1aa   : > { %586 = vmatpush.msra.mxu2 %v558_v56  ;;  %606 = vmatpush.msra.mxu3 %v559_v57 }
 0x1ac   : > { %v545_v59 = vpop.permute.xlu0 %544  ;;  %v547_v60 = vpop.permute.xlu1 %546 }
 0x1ad   : > { %v548_v61 = vsel %vm403_vm2, %v545_v59, %v547_v60  ;;  %v549_v62 = vsel %vm403_vm2, %v547_v60, %v545_v59  ;;  %v511_v22 = vpop.permute.xlu2 %510 }
 0x1ae   : > { %v550_v63 = vmul.f32 %v548_v61, %v1033_v23  ;;  %v551_v0 = vmul.f32 %v549_v62, %v1035_v24  ;;  %v689_v62 = vld [vmem:[%s1303_s7] sm:$0xff] }
 0x1b0   : > { %587 = vmatpush.msra.mxu2 %v550_v63  ;;  %607 = vmatpush.msra.mxu3 %v551_v0 }
 0x1b4   : > { %v539_v5 = vpop.permute.xlu0 %538  ;;  %v527_v7 = vpop.permute.xlu1 %526 }
 0x1b5   : > { %v540_v8 = vsel %vm387_vm3, %v537_v45, %v539_v5  ;;  %v541_v9 = vsel %vm387_vm3, %v539_v5, %v537_v45  ;;  %v530_v14 = vsel %vm362_vm4, %v527_v7, %v529_v1  ;;  %v531_v17 = vsel %vm362_vm4, %v529_v1, %v527_v7  ;;  %v505_v35 = vpop.permute.xlu2 %504 }
 0x1b6   : > { %v542_v12 = vmul.f32 %v540_v8, %v1050_v32  ;;  %v543_v13 = vmul.f32 %v541_v9, %v1052_v33  ;;  %v532_v25 = vmul.f32 %v531_v17, %v1080_v50  ;;  %v533_v26 = vmul.f32 %v530_v14, %v1082_v51 }
 0x1b8   : > { %588 = vmatpush.msra.mxu2 %v542_v12  ;;  %608 = vmatpush.msra.mxu3 %v543_v13 }
 0x1ba   : > { %589 = vmatpush.msra.mxu2 %v534_v20  ;;  %609 = vmatpush.msra.mxu3 %v535_v21 }
 0x1bc   : > { %v519_v27 = vpop.permute.xlu0 %518  ;;  %v521_v28 = vpop.permute.xlu1 %520  ;;  %590 = vmatpush.msra.mxu2 %v532_v25  ;;  %610 = vmatpush.msra.mxu3 %v533_v26 }
 0x1bd   : > { %v522_v29 = vsel %vm346_vm5, %v519_v27, %v521_v28  ;;  %v523_v30 = vsel %vm346_vm5, %v521_v28, %v519_v27 }
 0x1be   : > { %v524_v31 = vmul.f32 %v523_v30, %v1085_v53  ;;  %v525_v34 = vmul.f32 %v522_v29, %v1087_v54 }
 0x1c0   : > { %591 = vmatpush.msra.mxu2 %v524_v31  ;;  %611 = vmatpush.msra.mxu3 %v525_v34 }
 0x1c4   : > { %v513_v38 = vpop.permute.xlu0 %512  ;;  %v503_v39 = vpop.permute.xlu1 %502 }
 0x1c5   : > { %v514_v40 = vsel %vm330_vm6, %v511_v22, %v513_v38  ;;  %v515_v41 = vsel %vm330_vm6, %v513_v38, %v511_v22  ;;  %v506_v42 = vsel %vm315_vm7, %v503_v39, %v505_v35  ;;  %v507_v43 = vsel %vm315_vm7, %v505_v35, %v503_v39 }
 0x1c6   : > { %v516_v44 = vmul.f32 %v515_v41, %v1105_v2  ;;  %v517_v45 = vmul.f32 %v514_v40, %v1107_v4  ;;  %v508_v46 = vmul.f32 %v507_v43, %v1119_v18  ;;  %v509_v47 = vmul.f32 %v506_v42, %v1121_v19 }
 0x1c8   : > { %592 = vmatpush.msra.mxu2 %v516_v44  ;;  %612 = vmatpush.msra.mxu3 %v517_v45 }
 0x1ca   : > { %593 = vmatpush.msra.mxu2 %v508_v46  ;;  %613 = vmatpush.msra.mxu3 %v509_v47 }
 0x1cb   : > { %855 = vmatmul.msk.f32.vlgmr.msra.gmra.mxu2 %vm454_vm8, %v568_v48  ;;  %856 = vmatmul.msk.f32.vlgmr.msra.gmra.mxu3 %vm454_vm8, %v568_v48 }
 0x1cc   : > { %v573_v49 = vpop.permute.xlu0 %572 }
 0x24e   : > { %v595_v52 = vpop.f32.mrf.mxu2  ;;  %v615_v55 = vpop.f32.mrf.mxu3 }
 0x24f   : > { %v596_v56 = vadd.f32 %v595_v52, %v573_v49  ;;  %v616_v57 = vadd.f32 %v615_v55, %v573_v49 }
 0x251   : > { %v618_v58 = vmul.f32 0.1, %v596_v56  ;;  %v619_v59 = vmul.f32 0.1, %v616_v57 }
 0x253   : > { %v620_v60 = vmax.f32 %v596_v56, %v618_v58  ;;  %v621_v61 = vmax.f32 %v616_v57, %v619_v59 }
 0x255   : > { %682 = vrot.lane.b32.xlu2 %v621_v61, %s897_s13  ;;  %664 = vrot.lane.b32.xlu0 %v620_v60, %s898_s14  ;;  %v655_v35 = vmul.f32 %v621_v61, %v1058_v37  ;;  %v654_v38 = vmul.f32 %v620_v60, %v1056_v36 }
 0x256   : > { %680 = vrot.lane.b32.xlu1 %v620_v60, %s897_s13 }
 0x25d   : > { %674 = vrot.lane.b32.xlu2 %v621_v61, %s896_s12  ;;  %658 = vrot.lane.b32.xlu0 %v621_v61, %s899_s15 }
 0x25e   : > { %672 = vrot.lane.b32.xlu1 %v620_v60, %s896_s12 }
 0x265   : > { %656 = vrot.lane.b32.xlu2 %v620_v60, %s899_s15  ;;  %638 = vrot.lane.b32.xlu0 %v620_v60, %s901_s17 }
 0x266   : > { %666 = vrot.lane.b32.xlu1 %v621_v61, %s898_s14 }
 0x26d   : > { %648 = vrot.lane.b32.xlu2 %v621_v61, %s900_s16  ;;  %632 = vrot.lane.b32.xlu0 %v621_v61, %s902_s18 }
 0x26e   : > { %646 = vrot.lane.b32.xlu1 %v620_v60, %s900_s16 }
 0x275   : > { %630 = vrot.lane.b32.xlu2 %v620_v60, %s902_s18  ;;  %692 = vperm.xlu0 %879, %v689_v62  }
 0x276   : > { %640 = vrot.lane.b32.xlu1 %v621_v61, %s901_s17  ;;  %s305_s17 = scalar_lea.vmem %s1304_s8, %s1308_s29 }
 0x27d   : > { %624 = vrot.lane.b32.xlu2 %v621_v61, %s903_s19 }
 0x27e   : > { %622 = vrot.lane.b32.xlu1 %v620_v60, %s903_s19 }
 0x2af   : > { %v683_v63 = vpop.permute.xlu2 %682 }
 0x2b7   : > { %v675_v0 = vpop.permute.xlu2 %674 }
 0x2bf   : > { %v657_v20 = vpop.permute.xlu2 %656 }
 0x2c7   : > { %v665_v1 = vpop.permute.xlu0 %664 }
 0x2c8   : > { %v681_v5 = vpop.permute.xlu1 %680 }
 0x2c9   : > { %v684_v7 = vsel %vm435_vm1, %v681_v5, %v683_v63  ;;  %v685_v8 = vsel %vm435_vm1, %v683_v63, %v681_v5 }
 0x2ca   : > { %v686_v9 = vmul.f32 %v684_v7, %v1011_v10  ;;  %v687_v12 = vmul.f32 %v685_v8, %v1013_v11 }
 0x2cc   : > { %705 = vmatpush.msrb.mxu0 %v686_v9  ;;  %725 = vmatpush.msrb.mxu1 %v687_v12 }
 0x2cf   : > { %v659_v21 = vpop.permute.xlu0 %658 }
 0x2d0   : > { %v673_v13 = vpop.permute.xlu1 %672  ;;  %v660_v11 = vsel %vm387_vm3, %v657_v20, %v659_v21  ;;  %v661_v26 = vsel %vm387_vm3, %v659_v21, %v657_v20 }
 0x2d1   : > { %v676_v14 = vsel %vm419_vm0, %v673_v13, %v675_v0  ;;  %v677_v17 = vsel %vm419_vm0, %v675_v0, %v673_v13  ;;  %v662_v31 = vmul.f32 %v660_v11, %v1050_v32  ;;  %v663_v34 = vmul.f32 %v661_v26, %v1052_v33 }
 0x2d2   : > { %v678_v22 = vmul.f32 %v676_v14, %v1019_v15  ;;  %v679_v25 = vmul.f32 %v677_v17, %v1021_v16  ;;  %v649_v16 = vpop.permute.xlu2 %648  ;;  %vm779_vm0 = vcmask 1040384  }
 0x2d4   : > { %706 = vmatpush.msrb.mxu0 %v678_v22  ;;  %726 = vmatpush.msrb.mxu1 %v679_v25 }
 0x2d7   : > { %v639_v30 = vpop.permute.xlu0 %638 }
 0x2d8   : > { %v667_v10 = vpop.permute.xlu1 %666 }
 0x2d9   : > { %v668_v27 = vsel %vm403_vm2, %v665_v1, %v667_v10  ;;  %v669_v28 = vsel %vm403_vm2, %v667_v10, %v665_v1  ;;  %vm784_vm2 = vcmp.lt.s32.totalorder %v313_v3, 256 }
 0x2da   : > { %v670_v29 = vmul.f32 %v668_v27, %v1033_v23  ;;  %v671_v15 = vmul.f32 %v669_v28, %v1035_v24  ;;  %v631_v33 = vpop.permute.xlu2 %630 }
 0x2dc   : > { %707 = vmatpush.msrb.mxu0 %v670_v29  ;;  %727 = vmatpush.msrb.mxu1 %v671_v15 }
 0x2de   : > { %708 = vmatpush.msrb.mxu0 %v662_v31  ;;  %728 = vmatpush.msrb.mxu1 %v663_v34 }
 0x2df   : > { %v633_v41 = vpop.permute.xlu0 %632 }
 0x2e0   : > { %729 = vmatpush.msrb.mxu1 %v655_v35  ;;  %v647_v39 = vpop.permute.xlu1 %646  ;;  %709 = vmatpush.msrb.mxu0 %v654_v38  ;;  %v634_v36 = vsel %vm330_vm6, %v631_v33, %v633_v41  ;;  %v635_v42 = vsel %vm330_vm6, %v633_v41, %v631_v33 }
 0x2e1   : > { %v650_v23 = vsel %vm362_vm4, %v647_v39, %v649_v16  ;;  %v651_v24 = vsel %vm362_vm4, %v649_v16, %v647_v39  ;;  %v636_v45 = vmul.f32 %v635_v42, %v1105_v2  ;;  %v637_v46 = vmul.f32 %v634_v36, %v1107_v4  ;;  %v688_v2 = vld [vmem:[%s1302_s6] sm:$0xff] }
 0x2e2   : > { %v652_v40 = vmul.f32 %v651_v24, %v1080_v50  ;;  %v653_v32 = vmul.f32 %v650_v23, %v1082_v51  ;;  %v625_v47 = vpop.permute.xlu2 %624 }
 0x2e4   : > { %710 = vmatpush.msrb.mxu0 %v652_v40  ;;  %730 = vmatpush.msrb.mxu1 %v653_v32 }
 0x2e7   : > { %v693_v4 = vpop.permute.xlu0 %692 }
 0x2e8   : > { %v641_v37 = vpop.permute.xlu1 %640 }
 0x2e9   : > { %v642_v43 = vsel %vm346_vm5, %v639_v30, %v641_v37  ;;  %v643_v44 = vsel %vm346_vm5, %v641_v37, %v639_v30 }
 0x2ea   : > { %v644_v50 = vmul.f32 %v643_v44, %v1085_v53  ;;  %v645_v51 = vmul.f32 %v642_v43, %v1087_v54 }
 0x2ec   : > { %711 = vmatpush.msrb.mxu0 %v644_v50  ;;  %731 = vmatpush.msrb.mxu1 %v645_v51 }
 0x2ee   : > { %712 = vmatpush.msrb.mxu0 %v636_v45  ;;  %732 = vmatpush.msrb.mxu1 %v637_v46 }
 0x2f0   : > { %v623_v48 = vpop.permute.xlu1 %622 }
 0x2f1   : > { %v626_v49 = vsel %vm315_vm7, %v623_v48, %v625_v47  ;;  %v627_v52 = vsel %vm315_vm7, %v625_v47, %v623_v48 }
 0x2f2   : > { %v628_v53 = vmul.f32 %v627_v52, %v1119_v18  ;;  %v629_v54 = vmul.f32 %v626_v49, %v1121_v19 }
 0x2f4   : > { %713 = vmatpush.msrb.mxu0 %v628_v53  ;;  %733 = vmatpush.msrb.mxu1 %v629_v54 }
 0x2f5   : > { %857 = vmatmul.msk.f32.vlgmr.msrb.gmra.mxu0 %vm454_vm8, %v688_v2  ;;  %858 = vmatmul.msk.f32.vlgmr.msrb.gmra.mxu1 %vm454_vm8, %v688_v2 }
 0x372   : > { %v715_v55 = vpop.f32.mrf.mxu0  ;;  %v735_v56 = vpop.f32.mrf.mxu1 }
 0x373   : > { %v716_v57 = vadd.f32 %v715_v55, %v693_v4  ;;  %v736_v6 = vadd.f32 %v735_v56, %v693_v4 }
 0x375   : > { %v738_v58 = vsub.f32 0.0, %v716_v57  ;;  %v739_v59 = vsub.f32 0.0, %v736_v6 }
 0x377   : > { %v740_v18 = vmul.f32 1.442695, %v738_v58  ;;  %v742_v60 = vmul.f32 1.442695, %v739_v59 }
 0x379   : > { %880 = vpow2.f32 %v740_v18 }
 0x37a   : > { %882 = vpow2.f32 %v742_v60 }
 0x37f   : > { %v881_v19 = vpop.eup %880 }
 0x380   : > { %v883_v61 = vpop.eup %882  ;;  %v744_v62 = vadd.f32 1.0, %v881_v19 }
 0x381   : > { %v745_v63 = vadd.f32 1.0, %v883_v61 }
 0x382   : > { %884 = vrcp.f32 %v744_v62  ;;  %vm751_vm11 = vweird.f32 %v744_v62  ;;  %v757_v21 = vand.u32 2147483648, %v744_v62  ;;  %v755_v25 = vand.u32 2147483647, %v744_v62 }
 0x383   : > { %886 = vrcp.f32 %v745_v63  ;;  %v772_v13 = vand.u32 2147483648, %v745_v63  ;;  %v770_v17 = vand.u32 2147483647, %v745_v63  ;;  %vm766_vm13 = vweird.f32 %v745_v63 }
 0x384   : > { %v758_v28 = vor.u32 1.1754944e-38, %v757_v21  ;;  %vm756_vm1 = vcmp.eq.f32.partialorder %v755_v25, 8.507059e+37 }
 0x385   : > { %v773_v11 = vor.u32 1.1754944e-38, %v772_v13  ;;  %vm771_vm15 = vcmp.eq.f32.partialorder %v770_v17, 8.507059e+37 }
 0x388   : > { %v885_v0 = vpop.eup %884 }
 0x389   : > { %v887_v1 = vpop.eup %886  ;;  %v747_v5 = vmul.f32 %v885_v0, %v744_v62  ;;  %vm752_vm9 = vweird.f32 %v885_v0 }
 0x38a   : > { %v762_v7 = vmul.f32 %v887_v1, %v745_v63  ;;  %vm767_vm10 = vweird.f32 %v887_v1  ;;  %vm1282_vm12 = vmor %vm751_vm11, %vm752_vm9 }
 0x38b   : > { %v748_v8 = vsub.f32 1.0, %v747_v5  ;;  %vm768_vm14 = vmor %vm766_vm13, %vm767_vm10 }
 0x38c   : > { %v763_v9 = vsub.f32 1.0, %v762_v7 }
 0x38d   : > { %v749_v12 = vmul.f32 %v885_v0, %v748_v8 }
 0x38e   : > { %v764_v14 = vmul.f32 %v887_v1, %v763_v9 }
 0x38f   : > { %v750_v20 = vadd.f32 %v885_v0, %v749_v12 }
 0x390   : > { %v765_v10 = vadd.f32 %v887_v1, %v764_v14 }
 0x391   : > { %v754_v26 = vsel %vm1282_vm12, %v885_v0, %v750_v20 }
 0x392   : > { %v769_v27 = vsel %vm768_vm14, %v887_v1, %v765_v10  ;;  %v759_v16 = vsel %vm756_vm1, %v758_v28, %v754_v26 }
 0x393   : > { %v774_v29 = vsel %vm771_vm15, %v773_v11, %v769_v27 }
 0x394   : > { %v778_v15 = vrot.slane %v774_v29, 7 }
 0x396   : > { %v780_v30 = vsel %vm779_vm0, %v759_v16, %v778_v15 }
 0x397   : > { %786 = vst.msk [vmem:[%s305_s17] sm:$0x3] %vm784_vm2, %v780_v30 }
 0x398 PF: > { %s18_s27 = sadd.s32 1, %s894_s27  }
 0x399   : > { %p15_p4 = scmp.ge.s32.totalorder %s18_s27, 4  }
 0x39b   :  { %17 = sbr.rel (!%p15_p4) target bundleno = 1 (0x1), region = 90 }

</bundles_post_ra>
